<compile_context>
chip_gen: v7x
topology: tpu7x:2x2x1
jax: 0.10.0
libtpu: 0.0.40
codegen_flags: <defaults>
</compile_context>

<pallas_src>
import functools
import math

import jax
import jax.numpy as jnp
from jax import lax
from jax.experimental import pallas as pl
from jax.experimental.pallas import tpu as pltpu

DROP_PROB = 0.1  # dropout prob of the reference module (identity in eval mode)


@functools.lru_cache(maxsize=1)
def _vmem_limit_bytes():
    """Scoped-VMEM budget: 64 MiB on 128-MiB parts (v5e/v6e), 32 MiB on v7x."""
    try:
        cap = pltpu.get_tpu_info().vmem_capacity_bytes
        return int(min(cap // 2, 64 * 1024 * 1024))
    except Exception:  # older jax / CPU tracing — stay at the conservative cap
        return 32 * 1024 * 1024


def _pick_tile(dim, candidates):
    """Largest candidate that evenly divides `dim`, else the full dim."""
    for c in candidates:
        if dim % c == 0:
            return c
    return dim


def _maybe_buffered_spec(block_shape, index_map, buffers):
    """BlockSpec with deeper pipelining for streamed K/V tiles when available."""
    if hasattr(pl, "Buffered"):
        try:
            return pl.BlockSpec(block_shape, index_map,
                                pipeline_mode=pl.Buffered(buffers))
        except TypeError:
            pass
    return pl.BlockSpec(block_shape, index_map)


# ----------------------------------------------------------------------------
# Tiled, pipelined linear:  (P, M, K) @ (P, K, N) + (P, 1, N) -> (P, M, N)
# ----------------------------------------------------------------------------
def _linear_kernel(x_ref, w_ref, b_ref, o_ref, acc_ref):
    # Blocks: x (1, bm, bk), w (1, bk, bn), b (1, 1, bn), o (1, bm, bn).
    k = pl.program_id(3)

    @pl.when(k == 0)
    def _init():
        acc_ref[...] = jnp.zeros_like(acc_ref)

    x = x_ref[0]
    w = w_ref[0]
    # Weights/activations are already bf16 (stored that way); these casts are
    # trace-time no-ops unless a caller feeds f32 activations.
    if x.dtype != jnp.bfloat16:
        x = x.astype(jnp.bfloat16)
    if w.dtype != jnp.bfloat16:
        w = w.astype(jnp.bfloat16)
    acc_ref[...] += jnp.dot(x, w, preferred_element_type=jnp.float32)

    @pl.when(k == pl.num_programs(3) - 1)
    def _finalize():
        o_ref[0] = (acc_ref[...] + b_ref[0]).astype(o_ref.dtype)


def pallas_stacked_linear(xs, ws, bs, *, out_dtype=None, bm=None, bn=None, bk=None):
    """xs: (P, M, K), ws: (P, K, N), bs: (P, 1, N) -> xs @ ws + bs : (P, M, N)."""
    P, M, K = xs.shape
    _, _, N = ws.shape
    out_dtype = out_dtype or xs.dtype

    # Keep the MXU M-tile >= 128: pad M once here instead of running a
    # degenerate bm=8..32 grid with masked partial stores.
    M_pad = M if M % 128 == 0 else ((M + 127) // 128) * 128
    if M_pad != M:
        xs = jnp.pad(xs, ((0, 0), (0, M_pad - M), (0, 0)))

    bm = bm or _pick_tile(M_pad, (256, 128))
    bn = bn or _pick_tile(N, (512, 256, 128))
    bk = bk or _pick_tile(K, (512, 256, 128))
    grid = (P, M_pad // bm, N // bn, K // bk)

    cost = pl.CostEstimate(
        flops=2 * P * M_pad * N * K,
        transcendentals=0,
        bytes_accessed=int(xs.size * xs.dtype.itemsize
                           + ws.size * ws.dtype.itemsize
                           + bs.size * bs.dtype.itemsize
                           + P * M_pad * N * jnp.dtype(out_dtype).itemsize),
    )
    out = pl.pallas_call(
        _linear_kernel,
        out_shape=jax.ShapeDtypeStruct((P, M_pad, N), out_dtype),
        grid=grid,
        in_specs=[
            pl.BlockSpec((1, bm, bk), lambda p, i, j, k: (p, i, k)),
            pl.BlockSpec((1, bk, bn), lambda p, i, j, k: (p, k, j)),
            pl.BlockSpec((1, 1, bn), lambda p, i, j, k: (p, 0, j)),
        ],
        out_specs=pl.BlockSpec((1, bm, bn), lambda p, i, j, k: (p, i, j)),
        scratch_shapes=[pltpu.VMEM((bm, bn), jnp.float32)],
        compiler_params=pltpu.CompilerParams(
            dimension_semantics=("parallel", "parallel", "parallel", "arbitrary"),
            vmem_limit_bytes=_vmem_limit_bytes(),
        ),
        cost_estimate=cost,
    )(xs, ws, bs)
    if M_pad != M:
        out = out[:, :M, :]
    return out


# ----------------------------------------------------------------------------
# Flash-style multi-head attention (online softmax over KV tiles), with the
# output projection optionally fused into the finalize step.
# ----------------------------------------------------------------------------
def _flash_mha_kernel(*refs, heads, vec_size, fuse_out):
    if fuse_out:
        (q_ref, k_ref, v_ref, wo_ref, bo_ref, o_ref,
         m_ref, l_ref, acc_ref, qh_ref) = refs
    else:
        q_ref, k_ref, v_ref, o_ref, m_ref, l_ref, acc_ref, qh_ref = refs
        wo_ref = bo_ref = None

    kv = pl.program_id(2)

    @pl.when(kv == 0)
    def _init():
        m_ref[...] = jnp.full_like(m_ref, -jnp.inf)
        l_ref[...] = jnp.zeros_like(l_ref)
        acc_ref[...] = jnp.zeros_like(acc_ref)
        # The q block is kv-invariant (resident across the KV axis); do the
        # 64-lane per-head slicing (XLU relayout) ONCE per (b, qi) here.
        # 1/sqrt(D) is already folded into the Q projection parameters.
        q = q_ref[0, 0]  # (bq, E) bf16
        for h in range(heads):
            qh_ref[h] = q[:, h * vec_size:(h + 1) * vec_size]

    k = k_ref[0, 0]  # (bkv, E) bf16
    v = v_ref[0, 0]  # (bkv, E) bf16

    for h in range(heads):  # static unroll over heads
        sl = slice(h * vec_size, (h + 1) * vec_size)
        kh = k[:, sl]          # (bkv, D) bf16
        vh = v[:, sl]          # (bkv, D) bf16
        qh = qh_ref[h]         # (bq,  D) bf16, pre-sliced / pre-scaled

        # q @ k^T without an explicit k.T: contract both operands on D.
        s = lax.dot_general(qh, kh, (((1,), (1,)), ((), ())),
                            preferred_element_type=jnp.float32)  # (bq, bkv) f32
        # TODO(synk): optional `mask` argument of forward() is not wired in.

        m_prev = m_ref[h]                                        # (bq, 1)
        m_new = jnp.maximum(m_prev, jnp.max(s, axis=-1, keepdims=True))
        alpha = jnp.exp(m_prev - m_new)
        p = jnp.exp(s - m_new)                                   # f32 softmax stats
        l_ref[h] = alpha * l_ref[h] + jnp.sum(p, axis=-1, keepdims=True)
        acc_ref[h] = alpha * acc_ref[h] + jnp.dot(
            p.astype(jnp.bfloat16), vh, preferred_element_type=jnp.float32)
        m_ref[h] = m_new

    @pl.when(kv == pl.num_programs(2) - 1)
    def _finalize():
        # Dropout on attention weights is identity in eval mode.
        outs = []
        for h in range(heads):
            inv_l = pl.reciprocal(l_ref[h], approx=True)   # EUP slot, ~free
            outs.append(acc_ref[h] * inv_l)                # (bq, D) f32
        # Lane-dense (bq, E) tile == "concat heads" layout directly.
        attn = jnp.concatenate(outs, axis=-1)
        if fuse_out:
            # Fused output projection: no (B,S,E) HBM round-trip.
            proj = jnp.dot(attn.astype(jnp.bfloat16), wo_ref[...],
                           preferred_element_type=jnp.float32) + bo_ref[...]
            o_ref[0] = proj.astype(o_ref.dtype)
        else:
            o_ref[0] = attn.astype(o_ref.dtype)


def pallas_mha_attention(qkv, heads, vec_size, *, w_out=None, b_out=None,
                         out_dtype=None, bq=None, bkv=None):
    """qkv: (3, B, S, E) stacked projected q/k/v -> (B, S, E).

    If w_out/b_out are given, the output projection is fused into the kernel.
    """
    _, B, S, E = qkv.shape
    assert heads * vec_size == E
    fuse_out = w_out is not None
    out_dtype = out_dtype or qkv.dtype
    # bq large (amortizes repeated K/V streaming); bkv capped at 128 so the
    # (bq, bkv) f32 scores/p tiles stay well under the 64-vreg register file.
    bq = bq or _pick_tile(S, (256, 128, 64, 32, 16, 8))
    bkv = bkv or _pick_tile(S, (128, 64, 32, 16, 8))
    grid = (B, S // bq, S // bkv)

    kern = functools.partial(_flash_mha_kernel, heads=heads,
                             vec_size=vec_size, fuse_out=fuse_out)

    flops = 4 * B * heads * S * S * vec_size
    bytes_accessed = (3 * B * S * E * qkv.dtype.itemsize
                      + B * S * E * jnp.dtype(out_dtype).itemsize)
    transcendentals = B * heads * S * S
    in_specs = [
        pl.BlockSpec((1, 1, bq, E), lambda b, qi, kv: (0, b, qi, 0)),         # q
        _maybe_buffered_spec((1, 1, bkv, E), lambda b, qi, kv: (1, b, kv, 0), 3),  # k
        _maybe_buffered_spec((1, 1, bkv, E), lambda b, qi, kv: (2, b, kv, 0), 3),  # v
    ]
    operands = (qkv, qkv, qkv)
    if fuse_out:
        in_specs += [
            pl.BlockSpec((E, E), lambda b, qi, kv: (0, 0)),   # w_out (bf16, kv-invariant)
            pl.BlockSpec((1, E), lambda b, qi, kv: (0, 0)),   # b_out (f32)
        ]
        operands += (w_out, b_out)
        flops += 2 * B * S * E * E
        bytes_accessed += w_out.size * w_out.dtype.itemsize + b_out.size * b_out.dtype.itemsize

    cost = pl.CostEstimate(flops=flops, transcendentals=transcendentals,
                           bytes_accessed=int(bytes_accessed))
    return pl.pallas_call(
        kern,
        out_shape=jax.ShapeDtypeStruct((B, S, E), out_dtype),
        grid=grid,
        in_specs=in_specs,
        out_specs=pl.BlockSpec((1, bq, E), lambda b, qi, kv: (b, qi, 0)),
        scratch_shapes=[
            pltpu.VMEM((heads, bq, 1), jnp.float32),            # running max
            pltpu.VMEM((heads, bq, 1), jnp.float32),            # running denominator
            pltpu.VMEM((heads, bq, vec_size), jnp.float32),     # running numerator
            pltpu.VMEM((heads, bq, vec_size), jnp.bfloat16),    # pre-sliced q heads
        ],
        compiler_params=pltpu.CompilerParams(
            dimension_semantics=("parallel", "parallel", "arbitrary"),
            vmem_limit_bytes=_vmem_limit_bytes(),
        ),
        cost_estimate=cost,
    )(*operands)


# ----------------------------------------------------------------------------
# Module wrapper
# ----------------------------------------------------------------------------
class MultiHeadAttentionPallas:
    """Pallas/TPU forward of the PyTorch MultiHeadAttention (eval mode)."""

    def __init__(self, model_size, heads_number, vector_size, key, dropout=DROP_PROB):
        assert model_size % heads_number == 0
        assert model_size == heads_number * vector_size
        self.model_size = model_size
        self.heads_number = heads_number
        self.vector_size = vector_size
        self.dropout = dropout  # identity in eval mode

        # 4 Linear(model_size, model_size): Q, K, V, output projection.
        # PyTorch-Linear-like uniform init; weights stored as (in, out).
        bound = 1.0 / math.sqrt(model_size)
        keys = jax.random.split(key, 8)
        ws, bs = [], []
        for i in range(4):
            ws.append(jax.random.uniform(keys[2 * i], (model_size, model_size),
                                         minval=-bound, maxval=bound,
                                         dtype=jnp.float32))
            bs.append(jax.random.uniform(keys[2 * i + 1], (model_size,),
                                         minval=-bound, maxval=bound,
                                         dtype=jnp.float32))
        # Raw f32 parameters (reference / parity with the PyTorch module).
        self.w_f32 = ws
        self.b_f32 = bs

        # Kernel-ready parameters: bf16 weights (halves weight DMA, no in-kernel
        # casts) with 1/sqrt(D) folded into the Q projection once at init.
        scale = 1.0 / math.sqrt(vector_size)
        self.w_qkv = jnp.stack([ws[0] * scale, ws[1], ws[2]]).astype(jnp.bfloat16)  # (3, E, E)
        self.b_qkv = jnp.stack([bs[0] * scale, bs[1], bs[2]])[:, None, :]           # (3, 1, E) f32
        self.w_out = ws[3].astype(jnp.bfloat16)                                     # (E, E)
        self.b_out = bs[3][None, :]                                                 # (1, E) f32

    def __call__(self, query, key, value, mask=None, *, fuse_output_projection=None,
                 linear_blocks=(None, None, None), attn_blocks=(None, None)):
        if mask is not None:
            # TODO(synk): optional attention mask (masked_fill before softmax) not implemented.
            raise NotImplementedError("mask is not supported by the Pallas kernel")
        B, S, E = query.shape
        M = B * S
        H, D = self.heads_number, self.vector_size
        bm, bn, bk = linear_blocks
        bq, bkv = attn_blocks
        if fuse_output_projection is None:
            # Fuse whenever the bf16 (E, E) output-projection weight fits VMEM comfortably.
            fuse_output_projection = (E * E * 2) <= (8 << 20)

        # Fused Q/K/V projection: (3, M, E) @ (3, E, E) + bias, bf16 in / bf16 out.
        xs = jnp.stack([query, key, value]).reshape(3, M, E).astype(jnp.bfloat16)
        qkv = pallas_stacked_linear(xs, self.w_qkv, self.b_qkv,
                                    out_dtype=jnp.bfloat16, bm=bm, bn=bn, bk=bk)
        qkv = qkv.reshape(3, B, S, E)  # free, contiguous reshape

        if fuse_output_projection:
            # Flash attention + fused output projection -> final (B, S, E) output.
            return pallas_mha_attention(qkv, H, D, w_out=self.w_out, b_out=self.b_out,
                                        out_dtype=query.dtype, bq=bq, bkv=bkv)

        # Fallback: attention (bf16 activation) + separate output projection.
        attn = pallas_mha_attention(qkv, H, D, out_dtype=jnp.bfloat16, bq=bq, bkv=bkv)
        out = pallas_stacked_linear(attn.reshape(1, M, E), self.w_out[None],
                                    self.b_out[None], out_dtype=query.dtype,
                                    bm=bm, bn=bn, bk=bk)
        return out.reshape(B, S, E)


# ----------------------------------------------------------------------------
# Plain-JAX reference for a sanity check
# ----------------------------------------------------------------------------
def reference_forward(mha, query, key, value):
    B, S, E = query.shape
    H, D = mha.heads_number, mha.vector_size
    projs = []
    for i, x in enumerate((query, key, value)):
        y = x.reshape(B * S, E) @ mha.w_f32[i] + mha.b_f32[i]
        projs.append(y.reshape(B, S, H, D).transpose(0, 2, 1, 3))
    q, k, v = projs
    scores = jnp.einsum("bhqd,bhkd->bhqk", q, k) / math.sqrt(D)
    attn = jax.nn.softmax(scores, axis=-1)
    out = jnp.einsum("bhqk,bhkd->bhqd", attn, v)
    out = out.transpose(0, 2, 1, 3).reshape(B * S, E)
    out = out @ mha.w_f32[3] + mha.b_f32[3]
    return out.reshape(B, S, E)


if __name__ == "__main__":
    # Small but tiling-exercising shapes: E multiple of 128, realistic head dim.
    B, S, E, H = 2, 128, 256, 4
    D = E // H

    root = jax.random.PRNGKey(0)
    k_params, k_q, k_k, k_v = jax.random.split(root, 4)

    mha = MultiHeadAttentionPallas(model_size=E, heads_number=H,
                                   vector_size=D, key=k_params)

    query = jax.random.normal(k_q, (B, S, E), dtype=jnp.float32)
    key_in = jax.random.normal(k_k, (B, S, E), dtype=jnp.float32)
    value = jax.random.normal(k_v, (B, S, E), dtype=jnp.float32)

    ref = reference_forward(mha, query, key_in, value)

    # Default path: fused output projection, large tiles.
    out_fused = jax.block_until_ready(mha(query, key_in, value))
    # Explicitly multi-tiled path: exercises the K-reduction accumulator and
    # the multi-step flash KV loop (online softmax rescaling).
    out_tiled = jax.block_until_ready(
        mha(query, key_in, value,
            linear_blocks=(128, 128, 128), attn_blocks=(64, 64)))
    # Non-fused fallback path (separate output-projection pallas_call).
    out_unfused = jax.block_until_ready(
        mha(query, key_in, value, fuse_output_projection=False))

    assert out_fused.shape == (B, S, E), out_fused.shape
    # bf16 storage/operands with f32 accumulation -> loose tolerance vs f32 reference
    # (intentional; pl.reciprocal(approx=True) also adds ~2^-12 relative error).
    assert jnp.allclose(out_fused, ref, atol=5e-2, rtol=5e-2), "fused path mismatch"
    assert jnp.allclose(out_tiled, ref, atol=5e-2, rtol=5e-2), "tiled path mismatch"
    assert jnp.allclose(out_unfused, ref, atol=5e-2, rtol=5e-2), "unfused path mismatch"
    assert jnp.allclose(out_fused, out_tiled, atol=5e-2, rtol=5e-2), "tiling-dependent mismatch"

    print("KERNEL_OK")
</pallas_src>

<mosaic_0001>
module attributes {stable_mosaic.version = 11 : i64} {
  func.func @_linear_kernel(%arg0: i32, %arg1: i32, %arg2: i32, %arg3: i32, %arg4: memref<1x256x256xbf16, #tpu.memory_space<vmem>>, %arg5: memref<1x256x256xbf16, #tpu.memory_space<vmem>>, %arg6: memref<1x1x256xf32, #tpu.memory_space<vmem>>, %arg7: memref<1x256x256xbf16, #tpu.memory_space<vmem>>, %arg8: memref<256x256xf32, #tpu.memory_space<vmem>>) attributes {dimension_semantics = [#tpu.dimension_semantics<parallel>, #tpu.dimension_semantics<parallel>, #tpu.dimension_semantics<parallel>, #tpu.dimension_semantics<arbitrary>], iteration_bounds = array<i64: 3, 1, 1, 1>, scalar_prefetch = 0 : i64, scratch_operands = 1 : i64, tpu.core_type = #tpu.core_type<tc>, window_params = [{transform_indices = @transform_0, window_bounds = array<i64: 1, 256, 256>}, {transform_indices = @transform_1, window_bounds = array<i64: 1, 256, 256>}, {transform_indices = @transform_2, window_bounds = array<i64: 1, 1, 256>}, {transform_indices = @transform_3, window_bounds = array<i64: 1, 256, 256>}]} {
    %c0_i32 = arith.constant 0 : i32
    %0 = arith.cmpi eq, %arg3, %c0_i32 : i32
    %1 = arith.extui %0 : i1 to i32
    %c0_i32_0 = arith.constant 0 : i32
    %2 = arith.cmpi ne, %1, %c0_i32_0 : i32
    scf.if %2 {
      %cst_12 = arith.constant 0.000000e+00 : f32
      %14 = vector.broadcast %cst_12 : f32 to vector<256x256xf32>
      %c0_13 = arith.constant 0 : index
      %c0_14 = arith.constant 0 : index
      %15 = vector.load %arg8[%c0_13, %c0_14] : memref<256x256xf32, #tpu.memory_space<vmem>>, vector<256x256xf32>
      tpu.vector_store %arg8[%c0_13, %c0_14], %14 {strides = array<i32>} : memref<256x256xf32, #tpu.memory_space<vmem>>, vector<256x256xf32>,
    } else {
    }
    %c0 = arith.constant 0 : index
    %c0_1 = arith.constant 0 : index
    %c0_2 = arith.constant 0 : index
    %3 = vector.load %arg4[%c0, %c0_1, %c0_2] : memref<1x256x256xbf16, #tpu.memory_space<vmem>>, vector<1x256x256xbf16>
    %4 = vector.shape_cast %3 : vector<1x256x256xbf16> to vector<256x256xbf16>
    %c0_3 = arith.constant 0 : index
    %c0_4 = arith.constant 0 : index
    %c0_5 = arith.constant 0 : index
    %5 = vector.load %arg5[%c0_3, %c0_4, %c0_5] : memref<1x256x256xbf16, #tpu.memory_space<vmem>>, vector<1x256x256xbf16>
    %6 = vector.shape_cast %5 : vector<1x256x256xbf16> to vector<256x256xbf16>
    %c0_6 = arith.constant 0 : index
    %c0_7 = arith.constant 0 : index
    %7 = vector.load %arg8[%c0_6, %c0_7] : memref<256x256xf32, #tpu.memory_space<vmem>>, vector<256x256xf32>
    %cst = arith.constant dense<0.000000e+00> : vector<256x256xf32>
    %8 = tpu.matmul %4, %6, %cst {dimension_numbers = #tpu.dot_dimension_numbers<[1], [0], [0], [1], [0, 0, 1, 1], [], []>} : vector<256x256xbf16>, vector<256x256xbf16>, vector<256x256xf32> -> vector<256x256xf32>
    %9 = arith.addf %7, %8 : vector<256x256xf32>
    %c0_8 = arith.constant 0 : index
    %c0_9 = arith.constant 0 : index
    %10 = vector.load %arg8[%c0_8, %c0_9] : memref<256x256xf32, #tpu.memory_space<vmem>>, vector<256x256xf32>
    tpu.vector_store %arg8[%c0_8, %c0_9], %9 {strides = array<i32>} : memref<256x256xf32, #tpu.memory_space<vmem>>, vector<256x256xf32>,
    %c0_i32_10 = arith.constant 0 : i32
    %11 = arith.cmpi eq, %arg3, %c0_i32_10 : i32
    %12 = arith.extui %11 : i1 to i32
    %c0_i32_11 = arith.constant 0 : i32
    %13 = arith.cmpi ne, %12, %c0_i32_11 : i32
    scf.if %13 {
      %c0_12 = arith.constant 0 : index
      %c0_13 = arith.constant 0 : index
      %14 = vector.load %arg8[%c0_12, %c0_13] : memref<256x256xf32, #tpu.memory_space<vmem>>, vector<256x256xf32>
      %c0_14 = arith.constant 0 : index
      %c0_15 = arith.constant 0 : index
      %c0_16 = arith.constant 0 : index
      %15 = vector.load %arg6[%c0_14, %c0_15, %c0_16] : memref<1x1x256xf32, #tpu.memory_space<vmem>>, vector<1x1x256xf32>
      %16 = vector.shape_cast %15 : vector<1x1x256xf32> to vector<1x256xf32>
      %17 = vector.broadcast %16 : vector<1x256xf32> to vector<256x256xf32>
      %18 = arith.addf %14, %17 : vector<256x256xf32>
      %19 = arith.truncf %18 : vector<256x256xf32> to vector<256x256xbf16>
      %c0_17 = arith.constant 0 : index
      %c0_18 = arith.constant 0 : index
      %c0_19 = arith.constant 0 : index
      %20 = vector.load %arg7[%c0_17, %c0_18, %c0_19] : memref<1x256x256xbf16, #tpu.memory_space<vmem>>, vector<1x256x256xbf16>
      %21 = vector.shape_cast %20 : vector<1x256x256xbf16> to vector<256x256xbf16>
      %22 = vector.shape_cast %19 : vector<256x256xbf16> to vector<1x256x256xbf16>
      tpu.vector_store %arg7[%c0_17, %c0_18, %c0_19], %22 {strides = array<i32>} : memref<1x256x256xbf16, #tpu.memory_space<vmem>>, vector<1x256x256xbf16>,
    } else {
    }
    return
  }
  func.func @transform_0(%arg0: i32, %arg1: i32, %arg2: i32, %arg3: i32) -> (i32, i32, i32) {
    %c0_i32 = arith.constant 0 : i32
    return %arg0, %arg1, %arg3 : i32, i32, i32
  }
  func.func @transform_1(%arg0: i32, %arg1: i32, %arg2: i32, %arg3: i32) -> (i32, i32, i32) {
    %c0_i32 = arith.constant 0 : i32
    return %arg0, %arg3, %arg2 : i32, i32, i32
  }
  func.func @transform_2(%arg0: i32, %arg1: i32, %arg2: i32, %arg3: i32) -> (i32, i32, i32) {
    %c0_i32 = arith.constant 0 : i32
    %c0_i32_0 = arith.constant 0 : i32
    return %arg0, %c0_i32, %arg2 : i32, i32, i32
  }
  func.func @transform_3(%arg0: i32, %arg1: i32, %arg2: i32, %arg3: i32) -> (i32, i32, i32) {
    %c0_i32 = arith.constant 0 : i32
    return %arg0, %arg1, %arg2 : i32, i32, i32
  }
}

</mosaic_0001>

<bundles_post_ra>
// kernel: tpu_custom_call.1
= control target key start
LH: loop header
LB: loop body
LE: loop exit
PB: predicated region body
PF: predicated region fallthrough
CT: control target
= control target key end

     0   :  { %8 = vsyncpa [#allocation4], 0  ;;  %s2619_s0 = inlined_call_operand.hbm [shape: bf16[3,256,256], index: 0, kind: input, shape index: {}]   ;;  %s2620_s1 = inlined_call_operand.hbm [shape: bf16[3,256,256], index: 1, kind: input, shape index: {}]   ;;  %s2621_s2 = inlined_call_operand.vmem [shape: f32[3,1,256], index: 2, kind: input, shape index: {}]   ;;  %s2622_s3 = inlined_call_operand.hbm [shape: bf16[3,256,256], index: 3, kind: output, shape index: {}]  }
   0x1   :  { %10 = vsyncpa [#allocation4 + $0x1], 0 }
   0x2   :  { %11 = vsyncpa [#allocation7], 0 }
   0x3   :  { %13 = vsyncpa [#allocation7 + $0x1], 0 }
   0x4   :  { %14 = vsyncpa [#allocation5], 0 }
   0x5   :  { %16 = vsyncpa [#allocation5 + $0x1], 0  ;;  %s2204_s12 = smov 0   ;;  %s2206_s13 = smov 0  }
   0x6   :  { %s2208_s14 = smov 0   ;;  %s2210_s15 = smov 0  }
   0x7   :  { %s2212_s16 = smov 0   ;;  %s2214_s17 = smov 0  }
   0x8 LB: > { %s1679_s18 = sadd.s32 4294967295, %s2175_s17   ;;  %s1680_s19 = sadd.s32 4294967294, %s2175_s17   ;;  %s2175_s17 = sphi %s2214_s17, %s22_s17   ;;  %s2171_s16 = sphi %s2212_s16, %s2639_s16   ;;  %s2167_s15 = sphi %s2210_s15, %s2638_s15   ;;  %s2163_s14 = sphi %s2208_s14, %s2637_s14   ;;  %s2159_s13 = sphi %s2206_s13, %s2636_s13   ;;  %s2155_s12 = sphi %s2204_s12, %s2635_s12  }
   0x9   : > { %s48_s20 = sadd.s32 1, %s2171_s16  ;;  %s59_s21 = sadd.s32 1, %s2163_s14 }
   0xa   : > { %p50_p0 = scmp.ge.s32.totalorder %s48_s20, 3  ;;  %p66_p1 = scmp.ne.s32.totalorder %s2163_s14, %s2159_s13 }
   0xb   : > { %p67_p2 = scmp.eq.s32.totalorder %s2175_s17, 0  ;;  %p72_p3 = scmp.ne.s32.totalorder %s2159_s13, %s2155_s12 }
   0xc   : > { %s2641_s20 = smov (%p50_p0, %s48_s20), 0  ;;  %p73_p5 = scmp.eq.s32.totalorder %s1679_s18, 0 }
   0xd   : > { %p2245_p4 = por %p67_p2, %p66_p1  ;;  %s52_s23 = ssub.s32 %s2171_s16, %s2641_s20 }
   0xe   : > { %p158_p6 = scmp.eq.s32.totalorder %s1679_s18, 2  ;;  %p57_p7 = scmp.eq.s32.totalorder %s52_s23, 0 }
   0xf   : > { %p2251_p8 = por %p73_p5, %p72_p3  ;;  %p164_p10 = scmp.eq.s32.totalorder %s1680_s19, 2 }
  0x10   : > { %p2255_p9 = por %p158_p6, %p66_p1  ;;  %p1879_p12 = scmp.lt.s32.totalorder %s2175_s17, 3 }
  0x11   : > { %s2626_s24 = scalar_select %p2251_p8, 1, 0 }
  0x12   : > { %s2627_s25 = scalar_select %p2255_p9, 1, 0 }
  0x13   : > { %s2260_s26 = scalar_select %p57_p7, %s2163_s14, %s59_s21  }
  0x14   : > { %p2262_p11 = por %p164_p10, %p72_p3  ;;  %s2268_s28 = sand.u32 1, %s2163_s14  }
  0x15   : > { %s1683_s29 = sshll.u32 %s2268_s28, 8  ;;  %s1795_s30 = sshll.u32 %s2171_s16, 12 }
  0x16   : > { %s2628_s27 = scalar_select %p2262_p11, 1, 0 }
  0x17   : > { %s2277_s6 = scalar_lea.hbm %s2619_s0, %s1795_s30  ;;  %s188_s7 = scalar_lea.vmem [#allocation3], %s1683_s29 }
  0x18   : > { %s200_s8 = sshll.u32 %s188_s7, 4  ;;  %p2285_p13 = pnand %p1879_p12, %p2245_p4  ;;  %s2281_s8 = int_to_ptr.vmem [resolvable:$true] %s200_s8 }
  0x19   : > { %s185_s10 = scalar_lea.sflag [#allocation4], %s2268_s28  ;;  %s2029_s11 = scalar_lea.hbm %s2277_s6, 4096 }
  0x1a   : > { %p2030_p1 = scmp.ne.s32.totalorder %s2277_s6, %s2029_s11  ;;  %p2031_p2 = pneg %p2285_p13 }
  0x1b   : > { %s2034_s21 = scalar_lea.hbm %s2619_s0, 12288  ;;  %p2035_p4 = scmp.lt.u32.totalorder %s2277_s6, %s2619_s0 }
  0x1c   : > { %p2032_p3 = pnand %p2031_p2, %p2030_p1  ;;  %p2036_p6 = scmp.lt.u32.totalorder %s2034_s21, %s2029_s11 }
  0x1d   : > { %p2038_p10 = scmp.lt.u32.totalorder %s2029_s11, %s2277_s6 }
  0x1e   : > { %p2033_p5 = pneg %p2032_p3  ;;  %p2037_p7 = por %p2036_p6, %p2035_p4 }
  0x20   : > { %p2039_p12 = por %p2038_p10, %p2037_p7 }
  0x22   : > { %p2040_p0 = pnand %p2039_p12, %p2033_p5 }
  0x24   : > { %2043 = shalt.err (!%p2040_p0)
}
  0x25   : > { %s2044_s4 = scalar_lea.vmem %s2281_s8, 4096  ;;  %s2177_s5 = smov [#allocation3]  }
  0x26   : > { %p2045_p1 = scmp.ne.s32.totalorder %s2281_s8, %s2044_s4  ;;  %s2049_s7 = sshll.u32 %s2177_s5, 4  ;;  %s2050_s7 = int_to_ptr.vmem [resolvable:$false] %s2049_s7 }
  0x27   : > { %s2051_s18 = scalar_lea.vmem %s2050_s7, 8192  ;;  %p2052_p9 = scmp.lt.s32.totalorder %s2281_s8, %s2050_s7 }
  0x28   : > { %p2047_p3 = pnand %p2045_p1, %p2031_p2  ;;  %p2053_p4 = scmp.lt.s32.totalorder %s2051_s18, %s2044_s4 }
  0x2a   : > { %p2048_p11 = pneg %p2047_p3  ;;  %p2054_p6 = por %p2053_p4, %p2052_p9 }
  0x2c   : > { %p2055_p7 = pnand %p2054_p6, %p2048_p11 }
  0x2e   : > { %2058 = shalt.err (!%p2055_p7)
}
  0x2f   : > { %s2178_s11 = smov 128   ;;  %s2179_s19 = smov 8  }
  0x30   : > { %1871 = dma.hbm_to_vmem [thread:$0]  (!%p2285_p13), %s2277_s6, 4096, %s2281_s8, %s185_s10, %s2178_s11, %s2178_s11, %s2179_s19  }
  0x31   : > { %p246_p9 = scmp.lt.s32.totalorder %s2175_s17, 4  ;;  %s2327_s23 = scalar_lea.hbm %s2620_s1, %s1795_s30 }
  0x32   : > { %p2630_p11 = scmp.ge.s32.totalorder %s2175_s17, 1  ;;  %s214_s5 = scalar_lea.vmem [#allocation6], %s1683_s29 }
  0x33   : > { %s226_s7 = sshll.u32 %s214_s5, 4  ;;  %s211_s6 = scalar_lea.sflag [#allocation7], %s2268_s28  ;;  %s2337_s7 = int_to_ptr.vmem [resolvable:$true] %s226_s7 }
  0x34   : > { %p2331_p0 = pnand %p2630_p11, %p246_p9  ;;  %s2059_s8 = scalar_lea.hbm %s2327_s23, 4096 }
  0x35   : > { %p2060_p5 = scmp.ne.s32.totalorder %s2327_s23, %s2059_s8  ;;  %s2064_s18 = scalar_lea.hbm %s2620_s1, 12288 }
  0x36   : > { %p2065_p1 = scmp.lt.u32.totalorder %s2327_s23, %s2620_s1  ;;  %p2066_p3 = scmp.lt.u32.totalorder %s2064_s18, %s2059_s8 }
  0x37   : > { %p2062_p10 = pnand %p2060_p5, %p2031_p2  ;;  %p2068_p6 = scmp.lt.u32.totalorder %s2059_s8, %s2327_s23 }
  0x38   : > { %p2067_p4 = por %p2066_p3, %p2065_p1 }
  0x39   : > { %p2063_p12 = pneg %p2062_p10 }
  0x3a   : > { %p2069_p7 = por %p2068_p6, %p2067_p4 }
  0x3c   : > { %p2070_p9 = pnand %p2069_p7, %p2063_p12 }
  0x3e   : > { %2073 = shalt.err (!%p2070_p9)
}
  0x3f   : > { %s2074_s29 = scalar_lea.vmem %s2337_s7, 4096  ;;  %s2180_s5 = smov [#allocation6]  }
  0x40   : > { %p2075_p11 = scmp.ne.s32.totalorder %s2337_s7, %s2074_s29  ;;  %s2079_s30 = sshll.u32 %s2180_s5, 4  ;;  %s2080_s30 = int_to_ptr.vmem [resolvable:$false] %s2079_s30 }
  0x41   : > { %s2081_s10 = scalar_lea.vmem %s2080_s30, 8192  ;;  %p2082_p8 = scmp.lt.s32.totalorder %s2337_s7, %s2080_s30 }
  0x42   : > { %p2077_p5 = pnand %p2075_p11, %p2031_p2  ;;  %p2083_p1 = scmp.lt.s32.totalorder %s2081_s10, %s2074_s29 }
  0x44   : > { %p2078_p10 = pneg %p2077_p5  ;;  %p2084_p3 = por %p2083_p1, %p2082_p8 }
  0x46   : > { %p2085_p4 = pnand %p2084_p3, %p2078_p10 }
  0x48   : > { %2088 = shalt.err (!%p2085_p4)
}
  0x49   : > { %1874 = dma.hbm_to_vmem [thread:$0]  (!%p2285_p13), %s2327_s23, 4096, %s2337_s7, %s211_s6, %s2178_s11, %s2178_s11, %s2179_s19  }
  0x4a   : > { %250 = sbr.rel (%p2331_p0) target bundleno = 439 (0x1b7), region = 32  ;;  %s2371_s8 = sand.u32 (!%p2331_p0), 1, %s2159_s13  }
  0x4b   : > { %s2374_s18 = sshll.u32 (!%p2331_p0), %s2371_s8, 8  ;;  %s253_s9 = scalar_lea.sflag (!%p2331_p0), [#allocation4], %s2371_s8 }
  0x4c   : > { %s2378_s21 = scalar_lea.vmem (!%p2331_p0), [#allocation3], %s2374_s18  ;;  %p2632_p8 = scmp.ne.s32.totalorder (!%p2331_p0), %s2626_s24, 0 }
  0x51   : > { %2142 = dma.done.wait (%p2632_p8), %s253_s9, 4096  }
  0x52   : > { %2144 = vsyncadd (%p2632_p8), %s253_s9, 4294963200  ;;  %s262_s28 = scalar_lea.sflag [#allocation7], %s2371_s8  ;;  %s2386_s11 = scalar_lea.vmem [#allocation6], %s2374_s18 }
  0x53   : > { %2146 = dma.done.wait (%p2632_p8), %s262_s28, 4096  }
  0x54   : > { %2148 = vsyncadd (%p2632_p8), %s262_s28, 4294963200  ;;  %v1933_v0 = vld [vmem:[%s2386_s11 + $0x4] ss:$8 sps:$4 sm:$0xff]   ;;  %v1935_v1 = vld [vmem:[%s2386_s11] ss:$8 sps:$4 sm:$0xff]   ;;  %p306_p13 = scmp.lt.s32.totalorder %s2167_s15, 2 }
  0x55   : > { %832 = vmatprep.subr.bf16.mxu0 %v1933_v0  ;;  %1830 = vmatprep.subr.bf16.mxu1 %v1933_v0  ;;  %v1936_v2 = vld [vmem:[%s2386_s11 + $0x14] ss:$8 sps:$4 sm:$0xff]   ;;  %v1938_v3 = vld [vmem:[%s2386_s11 + $0x10] ss:$8 sps:$4 sm:$0xff]   ;;  %v1939_v4 = vld [vmem:[%s2386_s11 + $0x24] ss:$8 sps:$4 sm:$0xff]   ;;  %v1222_v0 = vlaneseq }
  0x56   : > { %833 = vmatpush1.bf16.msra.mxu0 %v1935_v1  ;;  %1846 = vmatpush1.bf16.msra.mxu1 %v1935_v1  ;;  %v1941_v5 = vld [vmem:[%s2386_s11 + $0x20] ss:$8 sps:$4 sm:$0xff]   ;;  %v1942_v6 = vld [vmem:[%s2386_s11 + $0x34] ss:$8 sps:$4 sm:$0xff]   ;;  %v1944_v7 = vld [vmem:[%s2386_s11 + $0x30] ss:$8 sps:$4 sm:$0xff]  }
  0x57   : > { %834 = vmatprep.subr.bf16.mxu0 %v1936_v2  ;;  %1831 = vmatprep.subr.bf16.mxu1 %v1936_v2  ;;  %v1945_v8 = vld [vmem:[%s2386_s11 + $0x44] ss:$8 sps:$4 sm:$0xff]   ;;  %v1947_v9 = vld [vmem:[%s2386_s11 + $0x40] ss:$8 sps:$4 sm:$0xff]   ;;  %v1948_v10 = vld [vmem:[%s2386_s11 + $0x54] ss:$8 sps:$4 sm:$0xff]  }
  0x58   : > { %v1950_v11 = vld [vmem:[%s2386_s11 + $0x50] ss:$8 sps:$4 sm:$0xff]   ;;  %v1951_v12 = vld [vmem:[%s2386_s11 + $0x64] ss:$8 sps:$4 sm:$0xff]   ;;  %v1953_v14 = vld [vmem:[%s2386_s11 + $0x60] ss:$8 sps:$4 sm:$0xff]  }
  0x59   : > { %v1983_v13 = vld [vmem:[%s2378_s21 + $0x4] ss:$8 sps:$4 sm:$0xff]   ;;  %v1954_v16 = vld [vmem:[%s2386_s11 + $0x74] ss:$8 sps:$4 sm:$0xff]   ;;  %v1956_v17 = vld [vmem:[%s2386_s11 + $0x70] ss:$8 sps:$4 sm:$0xff]  }
  0x5a   : > { %835 = vmatpush1.bf16.msra.mxu0 %v1938_v3  ;;  %1847 = vmatpush1.bf16.msra.mxu1 %v1938_v3  ;;  %v1986_v15 = vld [vmem:[%s2378_s21 + $0x84] ss:$8 sps:$4 sm:$0xff]   ;;  %v1959_v19 = vld [vmem:[%s2386_s11 + $0x80] ss:$8 sps:$4 sm:$0xff]   ;;  %v1960_v20 = vld [vmem:[%s2386_s11 + $0x94] ss:$8 sps:$4 sm:$0xff]  }
  0x5b   : > { %836 = vmatprep.subr.bf16.mxu0 %v1939_v4  ;;  %1832 = vmatprep.subr.bf16.mxu1 %v1939_v4  ;;  %v1957_v18 = vld [vmem:[%s2386_s11 + $0x84] ss:$8 sps:$4 sm:$0xff]   ;;  %v1962_v21 = vld [vmem:[%s2386_s11 + $0x90] ss:$8 sps:$4 sm:$0xff]   ;;  %v1965_v23 = vld [vmem:[%s2386_s11 + $0xa0] ss:$8 sps:$4 sm:$0xff]  }
  0x5c   : > { %864 = vmatprep.mubr.bf16.mxu0 %v1983_v13  ;;  %944 = vmatprep.mubr.bf16.mxu1 %v1986_v15  ;;  %v1963_v22 = vld [vmem:[%s2386_s11 + $0xa4] ss:$8 sps:$4 sm:$0xff]   ;;  %v1966_v24 = vld [vmem:[%s2386_s11 + $0xb4] ss:$8 sps:$4 sm:$0xff]   ;;  %v1968_v25 = vld [vmem:[%s2386_s11 + $0xb0] ss:$8 sps:$4 sm:$0xff]  }
  0x5d   : > { %v1969_v26 = vld [vmem:[%s2386_s11 + $0xc4] ss:$8 sps:$4 sm:$0xff]   ;;  %v1971_v27 = vld [vmem:[%s2386_s11 + $0xc0] ss:$8 sps:$4 sm:$0xff]   ;;  %v1972_v28 = vld [vmem:[%s2386_s11 + $0xd4] ss:$8 sps:$4 sm:$0xff]  }
  0x5e   : > { %837 = vmatpush1.bf16.msra.mxu0 %v1941_v5  ;;  %1848 = vmatpush1.bf16.msra.mxu1 %v1941_v5  ;;  %v1974_v29 = vld [vmem:[%s2386_s11 + $0xd0] ss:$8 sps:$4 sm:$0xff]   ;;  %v1975_v30 = vld [vmem:[%s2386_s11 + $0xe4] ss:$8 sps:$4 sm:$0xff]   ;;  %v1977_v31 = vld [vmem:[%s2386_s11 + $0xe0] ss:$8 sps:$4 sm:$0xff]  }
  0x5f   : > { %838 = vmatprep.subr.bf16.mxu0 %v1942_v6  ;;  %1833 = vmatprep.subr.bf16.mxu1 %v1942_v6  ;;  %v1978_v32 = vld [vmem:[%s2386_s11 + $0xf4] ss:$8 sps:$4 sm:$0xff]   ;;  %v1980_v33 = vld [vmem:[%s2386_s11 + $0xf0] ss:$8 sps:$4 sm:$0xff]   ;;  %v1981_v34 = vld [vmem:[%s2378_s21] ss:$8 sps:$4 sm:$0xff]  }
  0x60   : > { %v1984_v35 = vld [vmem:[%s2378_s21 + $0x80] ss:$8 sps:$4 sm:$0xff]   ;;  %v1987_v36 = vld [vmem:[%s2378_s21 + $0x14] ss:$8 sps:$4 sm:$0xff]   ;;  %v1991_v38 = vld [vmem:[%s2378_s21 + $0x10] ss:$8 sps:$4 sm:$0xff]  }
  0x61   : > { %v1989_v37 = vld [vmem:[%s2378_s21 + $0x94] ss:$8 sps:$4 sm:$0xff]   ;;  %v1992_v39 = vld [vmem:[%s2378_s21 + $0x90] ss:$8 sps:$4 sm:$0xff]   ;;  %v1993_v40 = vld [vmem:[%s2378_s21 + $0x24] ss:$8 sps:$4 sm:$0xff]  }
  0x62   : > { %839 = vmatpush1.bf16.msra.mxu0 %v1944_v7  ;;  %1849 = vmatpush1.bf16.msra.mxu1 %v1944_v7  ;;  %v1995_v41 = vld [vmem:[%s2378_s21 + $0xa4] ss:$8 sps:$4 sm:$0xff]   ;;  %v1997_v42 = vld [vmem:[%s2378_s21 + $0x20] ss:$8 sps:$4 sm:$0xff]   ;;  %v1999_v44 = vld [vmem:[%s2378_s21 + $0x34] ss:$8 sps:$4 sm:$0xff]  }
  0x63   : > { %840 = vmatprep.subr.bf16.mxu0 %v1945_v8  ;;  %1834 = vmatprep.subr.bf16.mxu1 %v1945_v8  ;;  %v1998_v43 = vld [vmem:[%s2378_s21 + $0xa0] ss:$8 sps:$4 sm:$0xff]   ;;  %v2001_v45 = vld [vmem:[%s2378_s21 + $0xb4] ss:$8 sps:$4 sm:$0xff]   ;;  %v2003_v46 = vld [vmem:[%s2378_s21 + $0x30] ss:$8 sps:$4 sm:$0xff]  }
  0x64   : > { %v2004_v47 = vld [vmem:[%s2378_s21 + $0xb0] ss:$8 sps:$4 sm:$0xff]   ;;  %v2005_v48 = vld [vmem:[%s2378_s21 + $0x44] ss:$8 sps:$4 sm:$0xff]   ;;  %v2009_v50 = vld [vmem:[%s2378_s21 + $0x40] ss:$8 sps:$4 sm:$0xff]  }
  0x65   : > { %v2007_v49 = vld [vmem:[%s2378_s21 + $0xc4] ss:$8 sps:$4 sm:$0xff]   ;;  %v2010_v51 = vld [vmem:[%s2378_s21 + $0xc0] ss:$8 sps:$4 sm:$0xff]   ;;  %v2011_v52 = vld [vmem:[%s2378_s21 + $0x54] ss:$8 sps:$4 sm:$0xff]  }
  0x66   : > { %841 = vmatpush1.bf16.msra.mxu0 %v1947_v9  ;;  %1850 = vmatpush1.bf16.msra.mxu1 %v1947_v9  ;;  %v2013_v53 = vld [vmem:[%s2378_s21 + $0xd4] ss:$8 sps:$4 sm:$0xff]   ;;  %v2015_v54 = vld [vmem:[%s2378_s21 + $0x50] ss:$8 sps:$4 sm:$0xff]   ;;  %v2017_v56 = vld [vmem:[%s2378_s21 + $0x64] ss:$8 sps:$4 sm:$0xff]  }
  0x67   : > { %842 = vmatprep.subr.bf16.mxu0 %v1948_v10  ;;  %1835 = vmatprep.subr.bf16.mxu1 %v1948_v10  ;;  %v2016_v55 = vld [vmem:[%s2378_s21 + $0xd0] ss:$8 sps:$4 sm:$0xff]   ;;  %v2019_v57 = vld [vmem:[%s2378_s21 + $0xe4] ss:$8 sps:$4 sm:$0xff]   ;;  %v2021_v58 = vld [vmem:[%s2378_s21 + $0x60] ss:$8 sps:$4 sm:$0xff]  }
  0x68   : > { %v2022_v59 = vld [vmem:[%s2378_s21 + $0xe0] ss:$8 sps:$4 sm:$0xff]   ;;  %v2023_v60 = vld [vmem:[%s2378_s21 + $0x74] ss:$8 sps:$4 sm:$0xff]   ;;  %v2027_v62 = vld [vmem:[%s2378_s21 + $0x70] ss:$8 sps:$4 sm:$0xff]  }
  0x69   : > { %v2025_v61 = vld [vmem:[%s2378_s21 + $0xf4] ss:$8 sps:$4 sm:$0xff]   ;;  %v2028_v63 = vld [vmem:[%s2378_s21 + $0xf0] ss:$8 sps:$4 sm:$0xff]   ;;  %s307_s24 = scalar_select %p306_p13, %s2167_s15, 2  ;;  %v1223_v1 = vshrl.u32 %v1222_v0, 7 }
  0x6a   : > { %843 = vmatpush1.bf16.msra.mxu0 %v1950_v11  ;;  %1851 = vmatpush1.bf16.msra.mxu1 %v1950_v11  ;;  %s2474_s6 = scalar_lea.vmem [#allocation8], %s2374_s18  ;;  %s1829_s22 = sshll.u32 %s2167_s15, 12 }
  0x6b   : > { %844 = vmatprep.subr.bf16.mxu0 %v1951_v12  ;;  %1836 = vmatprep.subr.bf16.mxu1 %v1951_v12  ;;  %s1693_s19 = sshll.u32 %s307_s24, 1  ;;  %v1224_v2 = vsub.s32 0, %v1223_v1  ;;  %v1228_v4 = vsub.s32 1, %v1223_v1  ;;  %s1539_s29 = sshll.u32 %s2474_s6, 4  ;;  %s2567_s29 = int_to_ptr.vmem [resolvable:$true] %s1539_s29 }
  0x6c   : > { %s312_s7 = scalar_lea.vmem %s2621_s2, %s1693_s19  ;;  %s2565_s15 = scalar_lea.hbm %s2622_s3, %s1829_s22 }
  0x6d   : > { %v1220_v3 = vld [vmem:[%s312_s7] sm:$0x3]  ;;  %s1521_s10 = scalar_lea.sflag [#allocation5], %s2371_s8  ;;  %s2089_s18 = scalar_lea.vmem %s2567_s29, 4096 }
  0x6e   : > { %845 = vmatpush1.bf16.msra.mxu0 %v1953_v14  ;;  %1852 = vmatpush1.bf16.msra.mxu1 %v1953_v14  ;;  %v2461_v5 = vrot.slane %v1220_v3, %v1224_v2  ;;  %v2463_v6 = vrot.slane %v1220_v3, %v1228_v4  ;;  %p2090_p2 = scmp.ne.s32.totalorder %s2567_s29, %s2089_s18  ;;  %p2633_p0 = scmp.ne.s32.totalorder %s2627_s25, 0 }
  0x6f   : > { %846 = vmatprep.subr.bf16.mxu0 %v1954_v16  ;;  %1837 = vmatprep.subr.bf16.mxu1 %v1954_v16  ;;  %s2181_s9 = smov [#allocation8]  }
  0x70   : > { %p2091_p12 = pnand %p2090_p2, %p2633_p0  ;;  %s2093_s21 = sshll.u32 %s2181_s9, 4  ;;  %s2094_s21 = int_to_ptr.vmem [resolvable:$false] %s2093_s21 }
  0x71   : > { %s2095_s28 = scalar_lea.vmem %s2094_s21, 8192  ;;  %p2096_p7 = scmp.lt.s32.totalorder %s2567_s29, %s2094_s21 }
  0x72   : > { %847 = vmatpush1.bf16.msra.mxu0 %v1956_v17  ;;  %1853 = vmatpush1.bf16.msra.mxu1 %v1956_v17  ;;  %p2092_p6 = pneg %p2091_p12  ;;  %p2097_p9 = scmp.lt.s32.totalorder %s2095_s28, %s2089_s18 }
  0x73   : > { %848 = vmatprep.subr.bf16.mxu0 %v1957_v18  ;;  %1838 = vmatprep.subr.bf16.mxu1 %v1957_v18 }
  0x74   : > { %p2098_p11 = por %p2097_p9, %p2096_p7 }
  0x76   : > { %849 = vmatpush1.bf16.msra.mxu0 %v1959_v19  ;;  %1854 = vmatpush1.bf16.msra.mxu1 %v1959_v19  ;;  %p2099_p5 = pnand %p2098_p11, %p2092_p6 }
  0x77   : > { %850 = vmatprep.subr.bf16.mxu0 %v1960_v20  ;;  %1839 = vmatprep.subr.bf16.mxu1 %v1960_v20 }
  0x7a   : > { %851 = vmatpush1.bf16.msra.mxu0 %v1962_v21  ;;  %1855 = vmatpush1.bf16.msra.mxu1 %v1962_v21 }
  0x7b   : > { %852 = vmatprep.subr.bf16.mxu0 %v1963_v22  ;;  %1840 = vmatprep.subr.bf16.mxu1 %v1963_v22 }
  0x7e   : > { %853 = vmatpush1.bf16.msra.mxu0 %v1965_v23  ;;  %1856 = vmatpush1.bf16.msra.mxu1 %v1965_v23 }
  0x7f   : > { %854 = vmatprep.subr.bf16.mxu0 %v1966_v24  ;;  %1841 = vmatprep.subr.bf16.mxu1 %v1966_v24 }
  0x82   : > { %855 = vmatpush1.bf16.msra.mxu0 %v1968_v25  ;;  %1857 = vmatpush1.bf16.msra.mxu1 %v1968_v25 }
  0x83   : > { %856 = vmatprep.subr.bf16.mxu0 %v1969_v26  ;;  %1842 = vmatprep.subr.bf16.mxu1 %v1969_v26 }
  0x86   : > { %857 = vmatpush1.bf16.msra.mxu0 %v1971_v27  ;;  %1858 = vmatpush1.bf16.msra.mxu1 %v1971_v27 }
  0x87   : > { %858 = vmatprep.subr.bf16.mxu0 %v1972_v28  ;;  %1843 = vmatprep.subr.bf16.mxu1 %v1972_v28 }
  0x8a   : > { %859 = vmatpush1.bf16.msra.mxu0 %v1974_v29  ;;  %1859 = vmatpush1.bf16.msra.mxu1 %v1974_v29 }
  0x8b   : > { %860 = vmatprep.subr.bf16.mxu0 %v1975_v30  ;;  %1844 = vmatprep.subr.bf16.mxu1 %v1975_v30 }
  0x8e   : > { %861 = vmatpush1.bf16.msra.mxu0 %v1977_v31  ;;  %1860 = vmatpush1.bf16.msra.mxu1 %v1977_v31 }
  0x8f   : > { %862 = vmatprep.subr.bf16.mxu0 %v1978_v32  ;;  %1845 = vmatprep.subr.bf16.mxu1 %v1978_v32 }
  0x92   : > { %863 = vmatpush1.bf16.msra.mxu0 %v1980_v33  ;;  %1861 = vmatpush1.bf16.msra.mxu1 %v1980_v33 }
  0x95   : > { %865 = vmatmul.mubr.bf16.vlgmr.msra.gmra.mrb[0].mxu0 %v1981_v34  ;;  %945 = vmatmul.mubr.bf16.vlgmr.msra.gmra.mrb[0].mxu1 %v1984_v35 }
  0x96   : > { %874 = vmatprep.mubr.bf16.mxu0 %v1987_v36  ;;  %954 = vmatprep.mubr.bf16.mxu1 %v1989_v37 }
  0x9d   : > { %875 = vmatmul.mubr.bf16.gmra.mrb[4].mxu0 %v1991_v38  ;;  %955 = vmatmul.mubr.bf16.gmra.mrb[4].mxu1 %v1992_v39 }
  0x9e   : > { %884 = vmatprep.mubr.bf16.mxu0 %v1993_v40  ;;  %964 = vmatprep.mubr.bf16.mxu1 %v1995_v41 }
  0xa5   : > { %885 = vmatmul.mubr.bf16.gmra.mrb[8].mxu0 %v1997_v42  ;;  %965 = vmatmul.mubr.bf16.gmra.mrb[8].mxu1 %v1998_v43 }
  0xa6   : > { %894 = vmatprep.mubr.bf16.mxu0 %v1999_v44  ;;  %974 = vmatprep.mubr.bf16.mxu1 %v2001_v45 }
  0xad   : > { %895 = vmatmul.mubr.bf16.gmra.mrb[12].mxu0 %v2003_v46  ;;  %975 = vmatmul.mubr.bf16.gmra.mrb[12].mxu1 %v2004_v47 }
  0xae   : > { %904 = vmatprep.mubr.bf16.mxu0 %v2005_v48  ;;  %984 = vmatprep.mubr.bf16.mxu1 %v2007_v49 }
  0xb5   : > { %905 = vmatmul.mubr.bf16.gmra.mrb[16].mxu0 %v2009_v50  ;;  %985 = vmatmul.mubr.bf16.gmra.mrb[16].mxu1 %v2010_v51 }
  0xb6   : > { %914 = vmatprep.mubr.bf16.mxu0 %v2011_v52  ;;  %994 = vmatprep.mubr.bf16.mxu1 %v2013_v53 }
  0xbd   : > { %915 = vmatmul.mubr.bf16.gmra.mrb[20].mxu0 %v2015_v54  ;;  %995 = vmatmul.mubr.bf16.gmra.mrb[20].mxu1 %v2016_v55 }
  0xbe   : > { %924 = vmatprep.mubr.bf16.mxu0 %v2017_v56  ;;  %1004 = vmatprep.mubr.bf16.mxu1 %v2019_v57 }
  0xc5   : > { %925 = vmatmul.mubr.bf16.gmra.mrb[24].mxu0 %v2021_v58  ;;  %1005 = vmatmul.mubr.bf16.gmra.mrb[24].mxu1 %v2022_v59 }
  0xc6   : > { %934 = vmatprep.mubr.bf16.mxu0 %v2023_v60  ;;  %1014 = vmatprep.mubr.bf16.mxu1 %v2025_v61 }
  0xcd   : > { %935 = vmatmul.mubr.bf16.gmra.mrb[28].mxu0 %v2027_v62  ;;  %1015 = vmatmul.mubr.bf16.gmra.mrb[28].mxu1 %v2028_v63 }
 0x168   : > { %v866_v7 = vpop.f32.mrb[0].mxu0  ;;  %v946_v8 = vpop.f32.mrb[0].mxu1 }
 0x169   : > { %v1232_v9 = vadd.f32 %v2461_v5, %v866_v7  ;;  %v1264_v10 = vadd.f32 %v2461_v5, %v946_v8  ;;  %v868_v11 = vpop.f32.mrb[1].mxu0  ;;  %v948_v12 = vpop.f32.mrb[1].mxu1 }
 0x16a   : > { %v1233_v13 = vadd.f32 %v2463_v6, %v868_v11  ;;  %v1265_v14 = vadd.f32 %v2463_v6, %v948_v12  ;;  %v870_v15 = vpop.f32.mrb[2].mxu0  ;;  %v950_v16 = vpop.f32.mrb[2].mxu1 }
 0x16b   : > { %v1234_v17 = vadd.f32 %v2461_v5, %v870_v15  ;;  %v1266_v18 = vadd.f32 %v2461_v5, %v950_v16  ;;  %v872_v19 = vpop.f32.mrb[3].mxu0  ;;  %v952_v20 = vpop.f32.mrb[3].mxu1 }
 0x16c   : > { %v1797_v21 = vpack.c.bf16 %v1233_v13, %v1232_v9  ;;  %v1813_v22 = vpack.c.bf16 %v1265_v14, %v1264_v10  ;;  %v1235_v23 = vadd.f32 %v2463_v6, %v872_v19  ;;  %v1267_v24 = vadd.f32 %v2463_v6, %v952_v20 }
 0x16e   : > { %1488 = vst [vmem:[%s2474_s6] sm:$0xff] %v1797_v21  ;;  %1504 = vst [vmem:[%s2474_s6 + $0x80] sm:$0xff] %v1813_v22  ;;  %v1798_v25 = vpack.c.bf16 %v1235_v23, %v1234_v17  ;;  %v1814_v26 = vpack.c.bf16 %v1267_v24, %v1266_v18 }
 0x170   : > { %1489 = vst [vmem:[%s2474_s6 + $0x8] sm:$0xff] %v1798_v25  ;;  %1505 = vst [vmem:[%s2474_s6 + $0x88] sm:$0xff] %v1814_v26  ;;  %v876_v27 = vpop.f32.mrb[4].mxu0  ;;  %v956_v28 = vpop.f32.mrb[4].mxu1 }
 0x171   : > { %v1236_v29 = vadd.f32 %v2461_v5, %v876_v27  ;;  %v1268_v30 = vadd.f32 %v2461_v5, %v956_v28  ;;  %v878_v31 = vpop.f32.mrb[5].mxu0  ;;  %v958_v32 = vpop.f32.mrb[5].mxu1 }
 0x172   : > { %v1237_v33 = vadd.f32 %v2463_v6, %v878_v31  ;;  %v1269_v34 = vadd.f32 %v2463_v6, %v958_v32  ;;  %v880_v35 = vpop.f32.mrb[6].mxu0  ;;  %v960_v36 = vpop.f32.mrb[6].mxu1 }
 0x173   : > { %v1238_v37 = vadd.f32 %v2461_v5, %v880_v35  ;;  %v1270_v38 = vadd.f32 %v2461_v5, %v960_v36  ;;  %v882_v39 = vpop.f32.mrb[7].mxu0  ;;  %v962_v40 = vpop.f32.mrb[7].mxu1 }
 0x174   : > { %v1799_v41 = vpack.c.bf16 %v1237_v33, %v1236_v29  ;;  %v1815_v42 = vpack.c.bf16 %v1269_v34, %v1268_v30  ;;  %v1239_v43 = vadd.f32 %v2463_v6, %v882_v39  ;;  %v1271_v44 = vadd.f32 %v2463_v6, %v962_v40 }
 0x176   : > { %1490 = vst [vmem:[%s2474_s6 + $0x10] sm:$0xff] %v1799_v41  ;;  %1506 = vst [vmem:[%s2474_s6 + $0x90] sm:$0xff] %v1815_v42  ;;  %v1800_v45 = vpack.c.bf16 %v1239_v43, %v1238_v37  ;;  %v1816_v46 = vpack.c.bf16 %v1271_v44, %v1270_v38 }
 0x178   : > { %1491 = vst [vmem:[%s2474_s6 + $0x18] sm:$0xff] %v1800_v45  ;;  %1507 = vst [vmem:[%s2474_s6 + $0x98] sm:$0xff] %v1816_v46  ;;  %v886_v47 = vpop.f32.mrb[8].mxu0  ;;  %v966_v48 = vpop.f32.mrb[8].mxu1 }
 0x179   : > { %v1240_v49 = vadd.f32 %v2461_v5, %v886_v47  ;;  %v1272_v50 = vadd.f32 %v2461_v5, %v966_v48  ;;  %v888_v51 = vpop.f32.mrb[9].mxu0  ;;  %v968_v52 = vpop.f32.mrb[9].mxu1 }
 0x17a   : > { %v1241_v53 = vadd.f32 %v2463_v6, %v888_v51  ;;  %v1273_v54 = vadd.f32 %v2463_v6, %v968_v52  ;;  %v890_v55 = vpop.f32.mrb[10].mxu0  ;;  %v970_v56 = vpop.f32.mrb[10].mxu1 }
 0x17b   : > { %v1242_v57 = vadd.f32 %v2461_v5, %v890_v55  ;;  %v1274_v58 = vadd.f32 %v2461_v5, %v970_v56  ;;  %v892_v59 = vpop.f32.mrb[11].mxu0  ;;  %v972_v60 = vpop.f32.mrb[11].mxu1 }
 0x17c   : > { %v1801_v61 = vpack.c.bf16 %v1241_v53, %v1240_v49  ;;  %v1817_v62 = vpack.c.bf16 %v1273_v54, %v1272_v50  ;;  %v1243_v63 = vadd.f32 %v2463_v6, %v892_v59  ;;  %v1275_v0 = vadd.f32 %v2463_v6, %v972_v60 }
 0x17e   : > { %1492 = vst [vmem:[%s2474_s6 + $0x20] sm:$0xff] %v1801_v61  ;;  %1508 = vst [vmem:[%s2474_s6 + $0xa0] sm:$0xff] %v1817_v62  ;;  %v1802_v1 = vpack.c.bf16 %v1243_v63, %v1242_v57  ;;  %v1818_v2 = vpack.c.bf16 %v1275_v0, %v1274_v58 }
 0x180   : > { %1493 = vst [vmem:[%s2474_s6 + $0x28] sm:$0xff] %v1802_v1  ;;  %1509 = vst [vmem:[%s2474_s6 + $0xa8] sm:$0xff] %v1818_v2  ;;  %v896_v3 = vpop.f32.mrb[12].mxu0  ;;  %v976_v4 = vpop.f32.mrb[12].mxu1 }
 0x181   : > { %v1244_v7 = vadd.f32 %v2461_v5, %v896_v3  ;;  %v1276_v8 = vadd.f32 %v2461_v5, %v976_v4  ;;  %v898_v9 = vpop.f32.mrb[13].mxu0  ;;  %v978_v10 = vpop.f32.mrb[13].mxu1 }
 0x182   : > { %v1245_v11 = vadd.f32 %v2463_v6, %v898_v9  ;;  %v1277_v12 = vadd.f32 %v2463_v6, %v978_v10  ;;  %v900_v13 = vpop.f32.mrb[14].mxu0  ;;  %v980_v14 = vpop.f32.mrb[14].mxu1 }
 0x183   : > { %v1246_v15 = vadd.f32 %v2461_v5, %v900_v13  ;;  %v1278_v16 = vadd.f32 %v2461_v5, %v980_v14  ;;  %v902_v17 = vpop.f32.mrb[15].mxu0  ;;  %v982_v18 = vpop.f32.mrb[15].mxu1 }
 0x184   : > { %v1803_v19 = vpack.c.bf16 %v1245_v11, %v1244_v7  ;;  %v1819_v20 = vpack.c.bf16 %v1277_v12, %v1276_v8  ;;  %v1247_v21 = vadd.f32 %v2463_v6, %v902_v17  ;;  %v1279_v22 = vadd.f32 %v2463_v6, %v982_v18 }
 0x186   : > { %1494 = vst [vmem:[%s2474_s6 + $0x30] sm:$0xff] %v1803_v19  ;;  %1510 = vst [vmem:[%s2474_s6 + $0xb0] sm:$0xff] %v1819_v20  ;;  %v1804_v23 = vpack.c.bf16 %v1247_v21, %v1246_v15  ;;  %v1820_v24 = vpack.c.bf16 %v1279_v22, %v1278_v16 }
 0x188   : > { %1495 = vst [vmem:[%s2474_s6 + $0x38] sm:$0xff] %v1804_v23  ;;  %1511 = vst [vmem:[%s2474_s6 + $0xb8] sm:$0xff] %v1820_v24  ;;  %v906_v25 = vpop.f32.mrb[16].mxu0  ;;  %v986_v26 = vpop.f32.mrb[16].mxu1 }
 0x189   : > { %v1248_v27 = vadd.f32 %v2461_v5, %v906_v25  ;;  %v1280_v28 = vadd.f32 %v2461_v5, %v986_v26  ;;  %v908_v29 = vpop.f32.mrb[17].mxu0  ;;  %v988_v30 = vpop.f32.mrb[17].mxu1 }
 0x18a   : > { %v1249_v31 = vadd.f32 %v2463_v6, %v908_v29  ;;  %v1281_v32 = vadd.f32 %v2463_v6, %v988_v30  ;;  %v910_v33 = vpop.f32.mrb[18].mxu0  ;;  %v990_v34 = vpop.f32.mrb[18].mxu1 }
 0x18b   : > { %v1250_v35 = vadd.f32 %v2461_v5, %v910_v33  ;;  %v1282_v36 = vadd.f32 %v2461_v5, %v990_v34  ;;  %v912_v37 = vpop.f32.mrb[19].mxu0  ;;  %v992_v38 = vpop.f32.mrb[19].mxu1 }
 0x18c   : > { %v1805_v39 = vpack.c.bf16 %v1249_v31, %v1248_v27  ;;  %v1821_v40 = vpack.c.bf16 %v1281_v32, %v1280_v28  ;;  %v1251_v41 = vadd.f32 %v2463_v6, %v912_v37  ;;  %v1283_v42 = vadd.f32 %v2463_v6, %v992_v38 }
 0x18e   : > { %1496 = vst [vmem:[%s2474_s6 + $0x40] sm:$0xff] %v1805_v39  ;;  %1512 = vst [vmem:[%s2474_s6 + $0xc0] sm:$0xff] %v1821_v40  ;;  %v1806_v43 = vpack.c.bf16 %v1251_v41, %v1250_v35  ;;  %v1822_v44 = vpack.c.bf16 %v1283_v42, %v1282_v36 }
 0x190   : > { %1497 = vst [vmem:[%s2474_s6 + $0x48] sm:$0xff] %v1806_v43  ;;  %1513 = vst [vmem:[%s2474_s6 + $0xc8] sm:$0xff] %v1822_v44  ;;  %v916_v45 = vpop.f32.mrb[20].mxu0  ;;  %v996_v46 = vpop.f32.mrb[20].mxu1 }
 0x191   : > { %v1252_v47 = vadd.f32 %v2461_v5, %v916_v45  ;;  %v1284_v48 = vadd.f32 %v2461_v5, %v996_v46  ;;  %v918_v49 = vpop.f32.mrb[21].mxu0  ;;  %v998_v50 = vpop.f32.mrb[21].mxu1 }
 0x192   : > { %v1253_v51 = vadd.f32 %v2463_v6, %v918_v49  ;;  %v1285_v52 = vadd.f32 %v2463_v6, %v998_v50  ;;  %v920_v53 = vpop.f32.mrb[22].mxu0  ;;  %v1000_v54 = vpop.f32.mrb[22].mxu1 }
 0x193   : > { %v1254_v55 = vadd.f32 %v2461_v5, %v920_v53  ;;  %v1286_v56 = vadd.f32 %v2461_v5, %v1000_v54  ;;  %v922_v57 = vpop.f32.mrb[23].mxu0  ;;  %v1002_v58 = vpop.f32.mrb[23].mxu1 }
 0x194   : > { %v1807_v59 = vpack.c.bf16 %v1253_v51, %v1252_v47  ;;  %v1823_v60 = vpack.c.bf16 %v1285_v52, %v1284_v48  ;;  %v1255_v61 = vadd.f32 %v2463_v6, %v922_v57  ;;  %v1287_v62 = vadd.f32 %v2463_v6, %v1002_v58 }
 0x196   : > { %1498 = vst [vmem:[%s2474_s6 + $0x50] sm:$0xff] %v1807_v59  ;;  %1514 = vst [vmem:[%s2474_s6 + $0xd0] sm:$0xff] %v1823_v60  ;;  %v1808_v63 = vpack.c.bf16 %v1255_v61, %v1254_v55  ;;  %v1824_v0 = vpack.c.bf16 %v1287_v62, %v1286_v56 }
 0x198   : > { %1499 = vst [vmem:[%s2474_s6 + $0x58] sm:$0xff] %v1808_v63  ;;  %1515 = vst [vmem:[%s2474_s6 + $0xd8] sm:$0xff] %v1824_v0  ;;  %v926_v1 = vpop.f32.mrb[24].mxu0  ;;  %v1006_v2 = vpop.f32.mrb[24].mxu1 }
 0x199   : > { %v1256_v3 = vadd.f32 %v2461_v5, %v926_v1  ;;  %v1288_v4 = vadd.f32 %v2461_v5, %v1006_v2  ;;  %v928_v7 = vpop.f32.mrb[25].mxu0  ;;  %v1008_v8 = vpop.f32.mrb[25].mxu1 }
 0x19a   : > { %v1257_v9 = vadd.f32 %v2463_v6, %v928_v7  ;;  %v1289_v10 = vadd.f32 %v2463_v6, %v1008_v8  ;;  %v930_v11 = vpop.f32.mrb[26].mxu0  ;;  %v1010_v12 = vpop.f32.mrb[26].mxu1 }
 0x19b   : > { %v1258_v13 = vadd.f32 %v2461_v5, %v930_v11  ;;  %v1290_v14 = vadd.f32 %v2461_v5, %v1010_v12  ;;  %v932_v15 = vpop.f32.mrb[27].mxu0  ;;  %v1012_v16 = vpop.f32.mrb[27].mxu1 }
 0x19c   : > { %v1809_v17 = vpack.c.bf16 %v1257_v9, %v1256_v3  ;;  %v1825_v18 = vpack.c.bf16 %v1289_v10, %v1288_v4  ;;  %v1259_v19 = vadd.f32 %v2463_v6, %v932_v15  ;;  %v1291_v20 = vadd.f32 %v2463_v6, %v1012_v16 }
 0x19e   : > { %1500 = vst [vmem:[%s2474_s6 + $0x60] sm:$0xff] %v1809_v17  ;;  %1516 = vst [vmem:[%s2474_s6 + $0xe0] sm:$0xff] %v1825_v18  ;;  %v1810_v21 = vpack.c.bf16 %v1259_v19, %v1258_v13  ;;  %v1826_v22 = vpack.c.bf16 %v1291_v20, %v1290_v14 }
 0x1a0   : > { %1501 = vst [vmem:[%s2474_s6 + $0x68] sm:$0xff] %v1810_v21  ;;  %1517 = vst [vmem:[%s2474_s6 + $0xe8] sm:$0xff] %v1826_v22  ;;  %v936_v23 = vpop.f32.mrb[28].mxu0  ;;  %v1016_v24 = vpop.f32.mrb[28].mxu1 }
 0x1a1   : > { %v1260_v25 = vadd.f32 %v2461_v5, %v936_v23  ;;  %v1292_v26 = vadd.f32 %v2461_v5, %v1016_v24  ;;  %v938_v27 = vpop.f32.mrb[29].mxu0  ;;  %v1018_v28 = vpop.f32.mrb[29].mxu1 }
 0x1a2   : > { %v1261_v29 = vadd.f32 %v2463_v6, %v938_v27  ;;  %v1293_v30 = vadd.f32 %v2463_v6, %v1018_v28  ;;  %v940_v31 = vpop.f32.mrb[30].mxu0  ;;  %v1020_v32 = vpop.f32.mrb[30].mxu1 }
 0x1a3   : > { %v1262_v33 = vadd.f32 %v2461_v5, %v940_v31  ;;  %v1294_v34 = vadd.f32 %v2461_v5, %v1020_v32  ;;  %v942_v35 = vpop.f32.mrb[31].mxu0  ;;  %v1022_v36 = vpop.f32.mrb[31].mxu1 }
 0x1a4   : > { %v1811_v37 = vpack.c.bf16 %v1261_v29, %v1260_v25  ;;  %v1827_v38 = vpack.c.bf16 %v1293_v30, %v1292_v26  ;;  %v1263_v39 = vadd.f32 %v2463_v6, %v942_v35  ;;  %v1295_v40 = vadd.f32 %v2463_v6, %v1022_v36 }
 0x1a6   : > { %1502 = vst [vmem:[%s2474_s6 + $0x70] sm:$0xff] %v1811_v37  ;;  %1518 = vst [vmem:[%s2474_s6 + $0xf0] sm:$0xff] %v1827_v38  ;;  %v1812_v5 = vpack.c.bf16 %v1263_v39, %v1262_v33  ;;  %v1828_v41 = vpack.c.bf16 %v1295_v40, %v1294_v34 }
 0x1a8   : > { %1503 = vst [vmem:[%s2474_s6 + $0x78] sm:$0xff] %v1812_v5  ;;  %1519 = vst [vmem:[%s2474_s6 + $0xf8] sm:$0xff] %v1828_v41 }
 0x1a9   : > { %2102 = shalt.err (!%p2099_p5)
}
 0x1aa   : > { %s2103_s11 = scalar_lea.hbm %s2565_s15, 4096  ;;  %s2107_s23 = scalar_lea.hbm %s2622_s3, 12288 }
 0x1ab   : > { %p2104_p10 = scmp.ne.s32.totalorder %s2565_s15, %s2103_s11  ;;  %p2108_p4 = scmp.lt.u32.totalorder %s2565_s15, %s2622_s3 }
 0x1ac   : > { %p2109_p8 = scmp.lt.u32.totalorder %s2107_s23, %s2103_s11  ;;  %p2111_p2 = scmp.lt.u32.totalorder %s2103_s11, %s2565_s15 }
 0x1ad   : > { %p2105_p1 = pnand %p2104_p10, %p2633_p0 }
 0x1ae   : > { %p2110_p13 = por %p2109_p8, %p2108_p4 }
 0x1af   : > { %p2106_p3 = pneg %p2105_p1 }
 0x1b0   : > { %p2112_p12 = por %p2111_p2, %p2110_p13 }
 0x1b2   : > { %p2113_p6 = pnand %p2112_p12, %p2106_p3 }
 0x1b4   : > { %2116 = shalt.err (!%p2113_p6)
}
 0x1b5   : > { %s2182_s6 = smov 128   ;;  %s2183_s22 = smov 8  }
 0x1b6   : > { %1866 = dma.vmem_to_hbm [thread:$0]  (%p2633_p0), %s2567_s29, 4096, %s2565_s15, %s1521_s10, %s2182_s6, %s2182_s6, %s2183_s22  }
 0x1b7 PF: > { %p1880_p7 = scmp.ge.s32.totalorder %s2175_s17, 2  ;;  %s1554_s5 = sand.u32 1, %s2155_s12  }
 0x1b8   : > { %p2634_p9 = scmp.ne.s32.totalorder %s2628_s27, 0  ;;  %s1555_s30 = scalar_lea.sflag [#allocation5], %s1554_s5 }
 0x1ba   : > { %p1876_p11 = pnand %p1880_p7, %p2634_p9 }
 0x1bc   : > { %2150 = dma.done.wait (!%p1876_p11), %s1555_s30, 4096  }
 0x1bd   : > { %2152 = vsyncadd (!%p1876_p11), %s1555_s30, 4294963200  ;;  %s22_s17 = sadd.s32 1, %s2175_s17   ;;  %s2635_s12 = smov %s2159_s13 }
 0x1be   : > { %p19_p5 = scmp.ge.s32.totalorder %s22_s17, 5   ;;  %s2636_s13 = smov %s2163_s14 }
 0x1bf   : > { %s2637_s14 = smov %s2260_s26  ;;  %s2638_s15 = smov %s2171_s16 }
 0x1c0   : > { %s2639_s16 = smov %s2641_s20  ;;  %21 = sbr.rel (!%p19_p5) target bundleno = 8 (0x8), region = 101 }
 0x1c7   :  { %1560 = vsyncpa [#allocation4], 1 }
 0x1c8   :  { %1562 = vsyncpa [#allocation4 + $0x1], 1 }
 0x1c9   :  { %1563 = vsyncpa [#allocation7], 1 }
 0x1ca   :  { %1565 = vsyncpa [#allocation7 + $0x1], 1 }
 0x1cb   :  { %1566 = vsyncpa [#allocation5], 1 }
 0x1cc   :  { %1568 = vsyncpa [#allocation5 + $0x1], 1 }

</bundles_post_ra>
